<compile_context>
chip_gen: v7x
topology: tpu7x:2x2x1
jax: 0.10.0
libtpu: 0.0.40
codegen_flags: <defaults>
</compile_context>

<pallas_src>
import jax
import jax.numpy as jnp
from jax.experimental import pallas as pl
from jax.experimental.pallas import tpu as pltpu

EMBED_DIM = 256
HALF = EMBED_DIM // 2       # 128
QUARTER = EMBED_DIM // 4    # 64
CAM_DIM = 16                # 9 rotation + 3 translation + 4 intrinsics

# Row indices in the packed f32 slab.
_B1_ROW = CAM_DIM           # 16
_B2_ROW = CAM_DIM + 1       # 17
_PB_ROW = CAM_DIM + 2       # 18
_F32_ROWS = CAM_DIM + 3     # 19


def _camera_embed_kernel(ext_ref, intr_ref, f32_ref, wbf16_ref, out_ref):
    """ext_ref : (4,4) f32 SMEM      (raw extrinsic matrix)
       intr_ref: (3,3) f32 SMEM      (raw intrinsic matrix)
       f32_ref : (19,256) f32 VMEM   rows [0:16]=fused W1, [16]=b1, [17]=b2, [18]=pb
       wbf16_ref: (2,256,256) bf16 VMEM  [0]=fused block-diag W2, [1]=projector W
       out_ref : (1,256) f32 VMEM."""
    f32 = jnp.float32
    bf16 = jnp.bfloat16

    # Packed camera-parameter scalars, ordered to match the fused W1 rows:
    # rotation (row-major extrinsic[:3,:3]), translation, [fx, fy, cx, cy].
    cam = (
        ext_ref[0, 0], ext_ref[0, 1], ext_ref[0, 2],
        ext_ref[1, 0], ext_ref[1, 1], ext_ref[1, 2],
        ext_ref[2, 0], ext_ref[2, 1], ext_ref[2, 2],
        ext_ref[0, 3], ext_ref[1, 3], ext_ref[2, 3],
        intr_ref[0, 0], intr_ref[1, 1], intr_ref[0, 2], intr_ref[1, 2],
    )

    # Layer 1 on the VPU: h = cam @ W1 + b1 as 16 scalar-broadcast FMAs (f32).
    h = f32_ref[_B1_ROW:_B1_ROW + 1, :]                       # (1, 256) = b1
    for k in range(CAM_DIM):
        h = h + cam[k] * f32_ref[k:k + 1, :]
    h = jnp.maximum(h, 0.0)                                   # ReLU

    # Layer 2 (block-diagonal) on the MXU + bias. Output lanes are already the
    # concatenated [rot_emb | trans_emb | intr_emb] — no explicit concat needed.
    h2 = (
        jnp.dot(h.astype(bf16), wbf16_ref[0], preferred_element_type=f32)
        + f32_ref[_B2_ROW:_B2_ROW + 1, :]
    )

    # Projector Linear(256, 256).
    out = (
        jnp.dot(h2.astype(bf16), wbf16_ref[1], preferred_element_type=f32)
        + f32_ref[_PB_ROW:_PB_ROW + 1, :]
    )
    out_ref[...] = out.astype(out_ref.dtype)


def init_params(key, embedding_dim=EMBED_DIM):
    """PyTorch nn.Linear-style init (uniform(-1/sqrt(fan_in), 1/sqrt(fan_in))).
    Weights stored as [in, out]."""
    half = embedding_dim // 2
    quarter = embedding_dim // 4

    def linear(key, fan_in, fan_out):
        kw, kb = jax.random.split(key)
        bound = 1.0 / jnp.sqrt(jnp.float32(fan_in))
        w = jax.random.uniform(kw, (fan_in, fan_out), jnp.float32, -bound, bound)
        b = jax.random.uniform(kb, (1, fan_out), jnp.float32, -bound, bound)
        return w, b

    keys = jax.random.split(key, 7)
    rw1, rb1 = linear(keys[0], 9, half)
    rw2, rb2 = linear(keys[1], half, half)
    tw1, tb1 = linear(keys[2], 3, quarter)
    tw2, tb2 = linear(keys[3], quarter, quarter)
    iw1, ib1 = linear(keys[4], 4, quarter)
    iw2, ib2 = linear(keys[5], quarter, quarter)
    pw, pb = linear(keys[6], embedding_dim, embedding_dim)
    return dict(
        rw1=rw1, rb1=rb1, rw2=rw2, rb2=rb2,
        tw1=tw1, tb1=tb1, tw2=tw2, tb2=tb2,
        iw1=iw1, ib1=ib1, iw2=iw2, ib2=ib2,
        pw=pw, pb=pb,
    )


def pack_params(p):
    """Build the two kernel slabs: block-diagonal fused weights + packed biases."""
    # Fused layer-1 weight: (16, 256), block-diagonal.
    w1 = jnp.zeros((CAM_DIM, EMBED_DIM), jnp.float32)
    w1 = w1.at[0:9, 0:HALF].set(p["rw1"])
    w1 = w1.at[9:12, HALF:HALF + QUARTER].set(p["tw1"])
    w1 = w1.at[12:16, HALF + QUARTER:EMBED_DIM].set(p["iw1"])
    b1 = jnp.concatenate([p["rb1"], p["tb1"], p["ib1"]], axis=-1)   # (1, 256)

    # Fused layer-2 weight: (256, 256), block-diagonal.
    w2 = jnp.zeros((EMBED_DIM, EMBED_DIM), jnp.float32)
    w2 = w2.at[0:HALF, 0:HALF].set(p["rw2"])
    w2 = w2.at[HALF:HALF + QUARTER, HALF:HALF + QUARTER].set(p["tw2"])
    w2 = w2.at[HALF + QUARTER:, HALF + QUARTER:].set(p["iw2"])
    b2 = jnp.concatenate([p["rb2"], p["tb2"], p["ib2"]], axis=-1)   # (1, 256)

    f32_slab = jnp.concatenate([w1, b1, b2, p["pb"]], axis=0)       # (19, 256) f32
    bf16_slab = jnp.stack([w2, p["pw"]]).astype(jnp.bfloat16)       # (2, 256, 256) bf16
    return dict(f32_slab=f32_slab, bf16_slab=bf16_slab)


@jax.jit
def camera_parameter_embedding(extrinsic, intrinsic, packed):
    """JAX/Pallas equivalent of CameraParameterEmbedding.forward.

    Args:
      extrinsic: (4, 4) float32 camera extrinsic matrix.
      intrinsic: (3, 3) float32 camera intrinsic matrix.
      packed:    dict from pack_params(init_params(...)).

    Returns:
      (256,) float32 embedding.
    """
    out = pl.pallas_call(
        _camera_embed_kernel,
        out_shape=jax.ShapeDtypeStruct((1, EMBED_DIM), jnp.float32),
        in_specs=[
            pl.BlockSpec(memory_space=pltpu.MemorySpace.SMEM),   # extrinsic
            pl.BlockSpec(memory_space=pltpu.MemorySpace.SMEM),   # intrinsic
            pl.BlockSpec(memory_space=pltpu.MemorySpace.VMEM),   # f32 slab
            pl.BlockSpec(memory_space=pltpu.MemorySpace.VMEM),   # bf16 slab
        ],
        out_specs=pl.BlockSpec(memory_space=pltpu.MemorySpace.VMEM),
    )(
        extrinsic.astype(jnp.float32),
        intrinsic.astype(jnp.float32),
        packed["f32_slab"],
        packed["bf16_slab"],
    )
    return out[0]  # (256,) to match the PyTorch 1-D output


def _reference(extrinsic, intrinsic, packed):
    """Pure-JAX reference mirroring the kernel's numerics (f32 layer 1,
    bf16 weights with f32 accumulation for layers 2/3)."""
    f32_slab = packed["f32_slab"]
    w1 = f32_slab[:CAM_DIM]          # (16, 256)
    b1 = f32_slab[_B1_ROW]           # (256,)
    b2 = f32_slab[_B2_ROW]
    pb = f32_slab[_PB_ROW]
    w2 = packed["bf16_slab"][0]      # (256, 256) bf16
    pw = packed["bf16_slab"][1]

    cam = jnp.concatenate([
        extrinsic[:3, :3].reshape(9),
        extrinsic[:3, 3],
        jnp.stack([intrinsic[0, 0], intrinsic[1, 1],
                   intrinsic[0, 2], intrinsic[1, 2]]),
    ]).astype(jnp.float32)           # (16,)

    # Mirror the kernel's sequential f32 FMA chain for layer 1.
    h = b1
    for k in range(CAM_DIM):
        h = h + cam[k] * w1[k]
    h = jnp.maximum(h, 0.0)

    h2 = jnp.dot(h.astype(jnp.bfloat16), w2,
                 preferred_element_type=jnp.float32) + b2
    out = jnp.dot(h2.astype(jnp.bfloat16), pw,
                  preferred_element_type=jnp.float32) + pb
    return out


if __name__ == "__main__":
    key = jax.random.PRNGKey(0)
    k_ext, k_int, k_params = jax.random.split(key, 3)

    # Deterministic small example inputs consistent with forward():
    # a 4x4 extrinsic matrix and a 3x3 intrinsic matrix.
    extrinsic = jax.random.normal(k_ext, (4, 4), jnp.float32)
    intrinsic = jnp.array(
        [[500.0, 0.0, 128.0],
         [0.0, 500.0, 96.0],
         [0.0, 0.0, 1.0]],
        jnp.float32,
    ) + 0.01 * jax.random.normal(k_int, (3, 3), jnp.float32)

    params = init_params(k_params)
    packed = pack_params(params)

    out = camera_parameter_embedding(extrinsic, intrinsic, packed)
    out = jax.block_until_ready(out)

    ref = _reference(extrinsic, intrinsic, packed)
    assert out.shape == (EMBED_DIM,)
    max_err = float(jnp.max(jnp.abs(out - ref)))
    assert jnp.allclose(out, ref, atol=0.5, rtol=1e-2), max_err
    print("KERNEL_OK")
</pallas_src>

<mosaic_0001>
module attributes {stable_mosaic.version = 11 : i64} {
  func.func @_camera_embed_kernel(%arg0: memref<4x4xf32, #tpu.memory_space<smem>>, %arg1: memref<3x3xf32, #tpu.memory_space<smem>>, %arg2: memref<19x256xf32, #tpu.memory_space<vmem>>, %arg3: memref<2x256x256xbf16, #tpu.memory_space<vmem>>, %arg4: memref<1x256xf32, #tpu.memory_space<vmem>>) attributes {dimension_semantics = [], scalar_prefetch = 0 : i64, scratch_operands = 0 : i64, tpu.core_type = #tpu.core_type<tc>} {
    %c0 = arith.constant 0 : index
    %c0_0 = arith.constant 0 : index
    %0 = memref.load %arg0[%c0, %c0_0] : memref<4x4xf32, #tpu.memory_space<smem>>
    %c0_1 = arith.constant 0 : index
    %c1 = arith.constant 1 : index
    %1 = memref.load %arg0[%c0_1, %c1] : memref<4x4xf32, #tpu.memory_space<smem>>
    %c0_2 = arith.constant 0 : index
    %c2 = arith.constant 2 : index
    %2 = memref.load %arg0[%c0_2, %c2] : memref<4x4xf32, #tpu.memory_space<smem>>
    %c1_3 = arith.constant 1 : index
    %c0_4 = arith.constant 0 : index
    %3 = memref.load %arg0[%c1_3, %c0_4] : memref<4x4xf32, #tpu.memory_space<smem>>
    %c1_5 = arith.constant 1 : index
    %c1_6 = arith.constant 1 : index
    %4 = memref.load %arg0[%c1_5, %c1_6] : memref<4x4xf32, #tpu.memory_space<smem>>
    %c1_7 = arith.constant 1 : index
    %c2_8 = arith.constant 2 : index
    %5 = memref.load %arg0[%c1_7, %c2_8] : memref<4x4xf32, #tpu.memory_space<smem>>
    %c2_9 = arith.constant 2 : index
    %c0_10 = arith.constant 0 : index
    %6 = memref.load %arg0[%c2_9, %c0_10] : memref<4x4xf32, #tpu.memory_space<smem>>
    %c2_11 = arith.constant 2 : index
    %c1_12 = arith.constant 1 : index
    %7 = memref.load %arg0[%c2_11, %c1_12] : memref<4x4xf32, #tpu.memory_space<smem>>
    %c2_13 = arith.constant 2 : index
    %c2_14 = arith.constant 2 : index
    %8 = memref.load %arg0[%c2_13, %c2_14] : memref<4x4xf32, #tpu.memory_space<smem>>
    %c0_15 = arith.constant 0 : index
    %c3 = arith.constant 3 : index
    %9 = memref.load %arg0[%c0_15, %c3] : memref<4x4xf32, #tpu.memory_space<smem>>
    %c1_16 = arith.constant 1 : index
    %c3_17 = arith.constant 3 : index
    %10 = memref.load %arg0[%c1_16, %c3_17] : memref<4x4xf32, #tpu.memory_space<smem>>
    %c2_18 = arith.constant 2 : index
    %c3_19 = arith.constant 3 : index
    %11 = memref.load %arg0[%c2_18, %c3_19] : memref<4x4xf32, #tpu.memory_space<smem>>
    %c0_20 = arith.constant 0 : index
    %c0_21 = arith.constant 0 : index
    %12 = memref.load %arg1[%c0_20, %c0_21] : memref<3x3xf32, #tpu.memory_space<smem>>
    %c1_22 = arith.constant 1 : index
    %c1_23 = arith.constant 1 : index
    %13 = memref.load %arg1[%c1_22, %c1_23] : memref<3x3xf32, #tpu.memory_space<smem>>
    %c0_24 = arith.constant 0 : index
    %c2_25 = arith.constant 2 : index
    %14 = memref.load %arg1[%c0_24, %c2_25] : memref<3x3xf32, #tpu.memory_space<smem>>
    %c1_26 = arith.constant 1 : index
    %c2_27 = arith.constant 2 : index
    %15 = memref.load %arg1[%c1_26, %c2_27] : memref<3x3xf32, #tpu.memory_space<smem>>
    %c16 = arith.constant 16 : index
    %c0_28 = arith.constant 0 : index
    %16 = vector.load %arg2[%c16, %c0_28] : memref<19x256xf32, #tpu.memory_space<vmem>>, vector<1x256xf32>
    %c0_29 = arith.constant 0 : index
    %c0_30 = arith.constant 0 : index
    %17 = vector.load %arg2[%c0_29, %c0_30] : memref<19x256xf32, #tpu.memory_space<vmem>>, vector<1x256xf32>
    %18 = vector.broadcast %0 : f32 to vector<1x256xf32>
    %19 = arith.mulf %18, %17 : vector<1x256xf32>
    %20 = arith.addf %16, %19 : vector<1x256xf32>
    %c1_31 = arith.constant 1 : index
    %c0_32 = arith.constant 0 : index
    %21 = vector.load %arg2[%c1_31, %c0_32] : memref<19x256xf32, #tpu.memory_space<vmem>>, vector<1x256xf32>
    %22 = vector.broadcast %1 : f32 to vector<1x256xf32>
    %23 = arith.mulf %22, %21 : vector<1x256xf32>
    %24 = arith.addf %20, %23 : vector<1x256xf32>
    %c2_33 = arith.constant 2 : index
    %c0_34 = arith.constant 0 : index
    %25 = vector.load %arg2[%c2_33, %c0_34] : memref<19x256xf32, #tpu.memory_space<vmem>>, vector<1x256xf32>
    %26 = vector.broadcast %2 : f32 to vector<1x256xf32>
    %27 = arith.mulf %26, %25 : vector<1x256xf32>
    %28 = arith.addf %24, %27 : vector<1x256xf32>
    %c3_35 = arith.constant 3 : index
    %c0_36 = arith.constant 0 : index
    %29 = vector.load %arg2[%c3_35, %c0_36] : memref<19x256xf32, #tpu.memory_space<vmem>>, vector<1x256xf32>
    %30 = vector.broadcast %3 : f32 to vector<1x256xf32>
    %31 = arith.mulf %30, %29 : vector<1x256xf32>
    %32 = arith.addf %28, %31 : vector<1x256xf32>
    %c4 = arith.constant 4 : index
    %c0_37 = arith.constant 0 : index
    %33 = vector.load %arg2[%c4, %c0_37] : memref<19x256xf32, #tpu.memory_space<vmem>>, vector<1x256xf32>
    %34 = vector.broadcast %4 : f32 to vector<1x256xf32>
    %35 = arith.mulf %34, %33 : vector<1x256xf32>
    %36 = arith.addf %32, %35 : vector<1x256xf32>
    %c5 = arith.constant 5 : index
    %c0_38 = arith.constant 0 : index
    %37 = vector.load %arg2[%c5, %c0_38] : memref<19x256xf32, #tpu.memory_space<vmem>>, vector<1x256xf32>
    %38 = vector.broadcast %5 : f32 to vector<1x256xf32>
    %39 = arith.mulf %38, %37 : vector<1x256xf32>
    %40 = arith.addf %36, %39 : vector<1x256xf32>
    %c6 = arith.constant 6 : index
    %c0_39 = arith.constant 0 : index
    %41 = vector.load %arg2[%c6, %c0_39] : memref<19x256xf32, #tpu.memory_space<vmem>>, vector<1x256xf32>
    %42 = vector.broadcast %6 : f32 to vector<1x256xf32>
    %43 = arith.mulf %42, %41 : vector<1x256xf32>
    %44 = arith.addf %40, %43 : vector<1x256xf32>
    %c7 = arith.constant 7 : index
    %c0_40 = arith.constant 0 : index
    %45 = vector.load %arg2[%c7, %c0_40] : memref<19x256xf32, #tpu.memory_space<vmem>>, vector<1x256xf32>
    %46 = vector.broadcast %7 : f32 to vector<1x256xf32>
    %47 = arith.mulf %46, %45 : vector<1x256xf32>
    %48 = arith.addf %44, %47 : vector<1x256xf32>
    %c8 = arith.constant 8 : index
    %c0_41 = arith.constant 0 : index
    %49 = vector.load %arg2[%c8, %c0_41] : memref<19x256xf32, #tpu.memory_space<vmem>>, vector<1x256xf32>
    %50 = vector.broadcast %8 : f32 to vector<1x256xf32>
    %51 = arith.mulf %50, %49 : vector<1x256xf32>
    %52 = arith.addf %48, %51 : vector<1x256xf32>
    %c9 = arith.constant 9 : index
    %c0_42 = arith.constant 0 : index
    %53 = vector.load %arg2[%c9, %c0_42] : memref<19x256xf32, #tpu.memory_space<vmem>>, vector<1x256xf32>
    %54 = vector.broadcast %9 : f32 to vector<1x256xf32>
    %55 = arith.mulf %54, %53 : vector<1x256xf32>
    %56 = arith.addf %52, %55 : vector<1x256xf32>
    %c10 = arith.constant 10 : index
    %c0_43 = arith.constant 0 : index
    %57 = vector.load %arg2[%c10, %c0_43] : memref<19x256xf32, #tpu.memory_space<vmem>>, vector<1x256xf32>
    %58 = vector.broadcast %10 : f32 to vector<1x256xf32>
    %59 = arith.mulf %58, %57 : vector<1x256xf32>
    %60 = arith.addf %56, %59 : vector<1x256xf32>
    %c11 = arith.constant 11 : index
    %c0_44 = arith.constant 0 : index
    %61 = vector.load %arg2[%c11, %c0_44] : memref<19x256xf32, #tpu.memory_space<vmem>>, vector<1x256xf32>
    %62 = vector.broadcast %11 : f32 to vector<1x256xf32>
    %63 = arith.mulf %62, %61 : vector<1x256xf32>
    %64 = arith.addf %60, %63 : vector<1x256xf32>
    %c12 = arith.constant 12 : index
    %c0_45 = arith.constant 0 : index
    %65 = vector.load %arg2[%c12, %c0_45] : memref<19x256xf32, #tpu.memory_space<vmem>>, vector<1x256xf32>
    %66 = vector.broadcast %12 : f32 to vector<1x256xf32>
    %67 = arith.mulf %66, %65 : vector<1x256xf32>
    %68 = arith.addf %64, %67 : vector<1x256xf32>
    %c13 = arith.constant 13 : index
    %c0_46 = arith.constant 0 : index
    %69 = vector.load %arg2[%c13, %c0_46] : memref<19x256xf32, #tpu.memory_space<vmem>>, vector<1x256xf32>
    %70 = vector.broadcast %13 : f32 to vector<1x256xf32>
    %71 = arith.mulf %70, %69 : vector<1x256xf32>
    %72 = arith.addf %68, %71 : vector<1x256xf32>
    %c14 = arith.constant 14 : index
    %c0_47 = arith.constant 0 : index
    %73 = vector.load %arg2[%c14, %c0_47] : memref<19x256xf32, #tpu.memory_space<vmem>>, vector<1x256xf32>
    %74 = vector.broadcast %14 : f32 to vector<1x256xf32>
    %75 = arith.mulf %74, %73 : vector<1x256xf32>
    %76 = arith.addf %72, %75 : vector<1x256xf32>
    %c15 = arith.constant 15 : index
    %c0_48 = arith.constant 0 : index
    %77 = vector.load %arg2[%c15, %c0_48] : memref<19x256xf32, #tpu.memory_space<vmem>>, vector<1x256xf32>
    %78 = vector.broadcast %15 : f32 to vector<1x256xf32>
    %79 = arith.mulf %78, %77 : vector<1x256xf32>
    %80 = arith.addf %76, %79 : vector<1x256xf32>
    %cst = arith.constant 0.000000e+00 : f32
    %81 = vector.broadcast %cst : f32 to vector<1x256xf32>
    %82 = arith.maximumf %80, %81 : vector<1x256xf32>
    %83 = arith.truncf %82 : vector<1x256xf32> to vector<1x256xbf16>
    %c0_49 = arith.constant 0 : index
    %c0_50 = arith.constant 0 : index
    %c0_51 = arith.constant 0 : index
    %84 = vector.load %arg3[%c0_49, %c0_50, %c0_51] : memref<2x256x256xbf16, #tpu.memory_space<vmem>>, vector<1x256x256xbf16>
    %85 = vector.shape_cast %84 : vector<1x256x256xbf16> to vector<256x256xbf16>
    %cst_52 = arith.constant dense<0.000000e+00> : vector<1x256xf32>
    %86 = tpu.matmul %83, %85, %cst_52 {dimension_numbers = #tpu.dot_dimension_numbers<[1], [0], [0], [1], [0, 0, 1, 1], [], []>} : vector<1x256xbf16>, vector<256x256xbf16>, vector<1x256xf32> -> vector<1x256xf32>
    %c17 = arith.constant 17 : index
    %c0_53 = arith.constant 0 : index
    %87 = vector.load %arg2[%c17, %c0_53] : memref<19x256xf32, #tpu.memory_space<vmem>>, vector<1x256xf32>
    %88 = arith.addf %86, %87 : vector<1x256xf32>
    %89 = arith.truncf %88 : vector<1x256xf32> to vector<1x256xbf16>
    %c1_54 = arith.constant 1 : index
    %c0_55 = arith.constant 0 : index
    %c0_56 = arith.constant 0 : index
    %90 = vector.load %arg3[%c1_54, %c0_55, %c0_56] : memref<2x256x256xbf16, #tpu.memory_space<vmem>>, vector<1x256x256xbf16>
    %91 = vector.shape_cast %90 : vector<1x256x256xbf16> to vector<256x256xbf16>
    %cst_57 = arith.constant dense<0.000000e+00> : vector<1x256xf32>
    %92 = tpu.matmul %89, %91, %cst_57 {dimension_numbers = #tpu.dot_dimension_numbers<[1], [0], [0], [1], [0, 0, 1, 1], [], []>} : vector<1x256xbf16>, vector<256x256xbf16>, vector<1x256xf32> -> vector<1x256xf32>
    %c18 = arith.constant 18 : index
    %c0_58 = arith.constant 0 : index
    %93 = vector.load %arg2[%c18, %c0_58] : memref<19x256xf32, #tpu.memory_space<vmem>>, vector<1x256xf32>
    %94 = arith.addf %92, %93 : vector<1x256xf32>
    %c0_59 = arith.constant 0 : index
    %c0_60 = arith.constant 0 : index
    %95 = vector.load %arg4[%c0_59, %c0_60] : memref<1x256xf32, #tpu.memory_space<vmem>>, vector<1x256xf32>
    tpu.vector_store %arg4[%c0_59, %c0_60], %94 {strides = array<i32>} : memref<1x256xf32, #tpu.memory_space<vmem>>, vector<1x256xf32>,
    return
  }
}

</mosaic_0001>

<bundles_post_ra>
// kernel: camera_parameter_embedding.1
= control target key start
LH: loop header
LB: loop body
LE: loop exit
PB: predicated region body
PF: predicated region fallthrough
CT: control target
= control target key end

     0   :  { %9 = vsyncpa [#allocation5], 0  ;;  %s1145_s0 = inlined_call_operand.hbm [shape: f32[4,4], index: 0, kind: input, shape index: {}]   ;;  %s1146_s1 = inlined_call_operand.hbm [shape: f32[3,3], index: 1, kind: input, shape index: {}]   ;;  %s1147_s2 = inlined_call_operand.hbm [shape: f32[19,256], index: 2, kind: input, shape index: {}]   ;;  %s1148_s3 = inlined_call_operand.hbm [shape: bf16[2,256,256], index: 3, kind: input, shape index: {}]   ;;  %s1149_s4 = inlined_call_operand.hbm [shape: f32[1,256], index: 4, kind: output, shape index: {}]  }
   0x1   :  { %10 = vsyncpa [#allocation7], 0 }
   0x2   :  { %11 = vsyncpa [#allocation3], 0 }
   0x3   :  { %12 = vsyncpa [#allocation10], 0 }
   0x4   :  { %13 = vsyncpa [#allocation4], 0  ;;  %s898_s17 = scalar_lea.hbm %s1145_s0, 64 }
   0x5   :  { %p899_p0 = scmp.ne.s32.totalorder %s1145_s0, %s898_s17  ;;  %p902_p1 = scmp.lt.u32.totalorder %s898_s17, %s1145_s0 }
   0x7   :  { %p904_p2 = pnand %p902_p1, %p899_p0 }
   0x9   :  { %907 = shalt.err (!%p904_p2)
}
   0xa   :  { %s994_s22 = smov [#allocation2]   ;;  %s908_s27 = scalar_lea.hbm %s1146_s1, 64 }
   0xb   :  { %21 = dma.hbm_to_smem %s1145_s0, 64, %s994_s22, [#allocation5]  }
   0xc   :  { %p909_p3 = scmp.ne.s32.totalorder %s1146_s1, %s908_s27  ;;  %p912_p4 = scmp.lt.u32.totalorder %s908_s27, %s1146_s1 }
   0xe   :  { %p914_p5 = pnand %p912_p4, %p909_p3 }
  0x10   :  { %917 = shalt.err (!%p914_p5)
}
  0x11   :  { %s995_s6 = smov [#allocation6]   ;;  %s996_s0 = smov [#allocation8]  }
  0x12   :  { %29 = dma.hbm_to_smem %s1146_s1, 64, %s995_s6, [#allocation7]  }
  0x13   :  { %s35_s9 = sshll.u32 %s996_s0, 4  ;;  %s918_s12 = scalar_lea.hbm %s1147_s2, 768  ;;  %s36_s9 = int_to_ptr.vmem [resolvable:$true] %s35_s9 }
  0x14   :  { %p919_p6 = scmp.ne.s32.totalorder %s1147_s2, %s918_s12  ;;  %p922_p7 = scmp.lt.u32.totalorder %s918_s12, %s1147_s2 }
  0x16   :  { %p924_p8 = pnand %p922_p7, %p919_p6 }
  0x18   :  { %927 = shalt.err (!%p924_p8)
}
  0x19   :  { %s928_s17 = scalar_lea.vmem %s36_s9, 768  ;;  %p933_p10 = scmp.lt.s32.totalorder %s36_s9, %s36_s9 }
  0x1a   :  { %p929_p9 = scmp.ne.s32.totalorder %s36_s9, %s928_s17  ;;  %p934_p11 = scmp.lt.s32.totalorder %s928_s17, %s928_s17 }
  0x1c   :  { %p935_p12 = por %p934_p11, %p933_p10 }
  0x1e   :  { %p936_p13 = pnand %p935_p12, %p929_p9 }
  0x20   :  { %939 = shalt.err (!%p936_p13)
}
  0x21   :  { %s997_s1 = smov 256   ;;  %s998_s18 = smov 16  }
  0x22   :  { %41 = dma.hbm_to_vmem [thread:$0]  %s1147_s2, 768, %s36_s9, [#allocation3], %s997_s1, %s997_s1, %s998_s18  }
  0x23   :  { %s999_s21 = smov [#allocation9]   ;;  %s940_s25 = scalar_lea.hbm %s1148_s3, 8192 }
  0x24   :  { %s47_s22 = sshll.u32 %s999_s21, 4  ;;  %p941_p0 = scmp.ne.s32.totalorder %s1148_s3, %s940_s25  ;;  %s48_s22 = int_to_ptr.vmem [resolvable:$true] %s47_s22 }
  0x25   :  { %p944_p1 = scmp.lt.u32.totalorder %s940_s25, %s1148_s3 }
  0x27   :  { %p946_p2 = pnand %p944_p1, %p941_p0 }
  0x29   :  { %949 = shalt.err (!%p946_p2)
}
  0x2a   :  { %s950_s30 = scalar_lea.vmem %s48_s22, 8192  ;;  %p955_p4 = scmp.lt.s32.totalorder %s48_s22, %s48_s22 }
  0x2b   :  { %p951_p3 = scmp.ne.s32.totalorder %s48_s22, %s950_s30  ;;  %p956_p5 = scmp.lt.s32.totalorder %s950_s30, %s950_s30 }
  0x2d   :  { %p957_p6 = por %p956_p5, %p955_p4 }
  0x2f   :  { %p958_p7 = pnand %p957_p6, %p951_p3 }
  0x31   :  { %961 = shalt.err (!%p958_p7)
}
  0x32   :  { %s1000_s2 = smov 128   ;;  %s1001_s5 = smov 8  }
  0x33   :  { %53 = dma.hbm_to_vmem [thread:$0]  %s1148_s3, 8192, %s48_s22, [#allocation10], %s1000_s2, %s1000_s2, %s1001_s5  }
  0x34   :  { %984 = dma.done.wait [#allocation5], 64  }
  0x35   :  { %985 = vsyncadd [#allocation5], 4294967232 }
  0x36   :  { %986 = dma.done.wait [#allocation7], 64  }
  0x37   :  { %987 = vsyncadd [#allocation7], 4294967232 }
  0x38   :  { %988 = dma.done.wait [#allocation3], 768  }
  0x39   :  { %989 = vsyncadd [#allocation3], 4294966528 }
  0x3a   :  { %990 = dma.done.wait [#allocation10], 8192  }
  0x3b   :  { %991 = vsyncadd [#allocation10], 4294959104 }
  0x3c   :  { %66 = sfence }
  0x3d   :  { %v802_v0 = vld [vmem:[#allocation9 + $0x4] ss:$8 sps:$4 sm:$0xff]   ;;  %v804_v1 = vld [vmem:[#allocation9] ss:$8 sps:$4 sm:$0xff]   ;;  %v805_v2 = vld [vmem:[#allocation9 + $0x14] ss:$8 sps:$4 sm:$0xff]  }
  0x3e   :  { %383 = vmatprep.subr.bf16.mxu0 %v802_v0  ;;  %v807_v3 = vld [vmem:[#allocation9 + $0x10] ss:$8 sps:$4 sm:$0xff]   ;;  %v808_v4 = vld [vmem:[#allocation9 + $0x24] ss:$8 sps:$4 sm:$0xff]   ;;  %v810_v5 = vld [vmem:[#allocation9 + $0x20] ss:$8 sps:$4 sm:$0xff]  }
  0x3f   :  { %384 = vmatpush1.bf16.msra.mxu0 %v804_v1  ;;  %v811_v6 = vld [vmem:[#allocation9 + $0x34] ss:$8 sps:$4 sm:$0xff]   ;;  %v813_v7 = vld [vmem:[#allocation9 + $0x30] ss:$8 sps:$4 sm:$0xff]   ;;  %v814_v8 = vld [vmem:[#allocation9 + $0x44] ss:$8 sps:$4 sm:$0xff]  }
  0x40   :  { %385 = vmatprep.subr.bf16.mxu0 %v805_v2  ;;  %s67_s3 = sld [smem:[#allocation2]]  ;;  %s714_s8 = sld [smem:[#allocation2 + $0x1]]  ;;  %v816_v9 = vld [vmem:[#allocation9 + $0x40] ss:$8 sps:$4 sm:$0xff]   ;;  %v817_v10 = vld [vmem:[#allocation9 + $0x54] ss:$8 sps:$4 sm:$0xff]  }
  0x41   :  { %s715_s0 = sld [smem:[#allocation2 + $0x2]]  ;;  %s1077_s9 = sld [smem:[#allocation2 + $0x80]]  ;;  %v819_v11 = vld [vmem:[#allocation9 + $0x50] ss:$8 sps:$4 sm:$0xff]   ;;  %v820_v12 = vld [vmem:[#allocation9 + $0x64] ss:$8 sps:$4 sm:$0xff]  }
  0x42   :  { %s1079_s10 = sld [smem:[#allocation2 + $0x81]]  ;;  %v822_v13 = vld [vmem:[#allocation9 + $0x60] ss:$8 sps:$4 sm:$0xff]   ;;  %v823_v14 = vld [vmem:[#allocation9 + $0x74] ss:$8 sps:$4 sm:$0xff]   ;;  %s1081_s11 = sld [smem:[#allocation2 + $0x82]] }
  0x43   :  { %386 = vmatpush1.bf16.msra.mxu0 %v807_v3  ;;  %s1083_s12 = sld [smem:[#allocation2 + $0x100]]  ;;  %v84_v17 = vld [vmem:[#allocation8 + $0x20] ss:$8 sm:$0x3]  ;;  %s1085_s13 = sld [smem:[#allocation2 + $0x101]] }
  0x44   :  { %387 = vmatprep.subr.bf16.mxu0 %v808_v4  ;;  %v85_v18 = vld [vmem:[#allocation8] ss:$8 sm:$0x3]  ;;  %v90_v19 = vld [vmem:[#allocation8 + $0x1] ss:$8 sm:$0x3] }
  0x45   :  { %v95_v23 = vld [vmem:[#allocation8 + $0x2] ss:$8 sm:$0x3]  ;;  %v100_v24 = vld [vmem:[#allocation8 + $0x3] ss:$8 sm:$0x3] }
  0x46   :  { %v86_v15 = vstv %s67_s3  ;;  %v91_v16 = vstv %s714_s8  ;;  %v825_v26 = vld [vmem:[#allocation9 + $0x70] ss:$8 sps:$4 sm:$0xff]   ;;  %v826_v27 = vld [vmem:[#allocation9 + $0x84] ss:$8 sps:$4 sm:$0xff]   ;;  %s1088_s14 = sld [smem:[#allocation2 + $0x102]]  ;;  %s1091_s15 = sld [smem:[#allocation2 + $0x3]] }
  0x47   :  { %388 = vmatpush1.bf16.msra.mxu0 %v810_v5  ;;  %v96_v20 = vstv %s715_s0  ;;  %v87_v21 = vmul.f32 %v86_v15, %v85_v18  ;;  %v92_v22 = vmul.f32 %v91_v16, %v90_v19  ;;  %v101_v25 = vstv %s1077_s9  ;;  %v105_v30 = vld [vmem:[#allocation8 + $0x4] ss:$8 sm:$0x3]  ;;  %v828_v32 = vld [vmem:[#allocation9 + $0x80] ss:$8 sps:$4 sm:$0xff]   ;;  %s1094_s16 = sld [smem:[#allocation2 + $0x83]] }
  0x48   :  { %389 = vmatprep.subr.bf16.mxu0 %v811_v6  ;;  %v97_v29 = vmul.f32 %v96_v20, %v95_v23  ;;  %v106_v31 = vstv %s1079_s10  ;;  %v102_v34 = vmul.f32 %v101_v25, %v100_v24  ;;  %v829_v35 = vld [vmem:[#allocation9 + $0x94] ss:$8 sps:$4 sm:$0xff]   ;;  %v111_v37 = vstv %s1081_s11  ;;  %v850_v42 = vld [vmem:[#allocation9 + $0x104] ss:$8 sps:$4 sm:$0xff]   ;;  %v852_v43 = vld [vmem:[#allocation9 + $0x100] ss:$8 sps:$4 sm:$0xff]  }
  0x49   :  { %v88_v28 = vadd.f32 %v87_v21, %v84_v17  ;;  %v110_v36 = vld [vmem:[#allocation8 + $0x5] ss:$8 sm:$0x3]  ;;  %v107_v39 = vmul.f32 %v106_v31, %v105_v30  ;;  %v115_v40 = vld [vmem:[#allocation8 + $0x6] ss:$8 sm:$0x3]  ;;  %v116_v41 = vstv %s1083_s12  ;;  %v121_v50 = vstv %s1085_s13  ;;  %632 = vmatprep.subr.bf16.mxu1 %v850_v42 }
  0x4a   :  { %v831_v44 = vld [vmem:[#allocation9 + $0x90] ss:$8 sps:$4 sm:$0xff]   ;;  %v112_v46 = vmul.f32 %v111_v37, %v110_v36  ;;  %v120_v47 = vld [vmem:[#allocation8 + $0x7] ss:$8 sm:$0x3]  ;;  %s1097_s17 = sld [smem:[#allocation2 + $0x103]]  ;;  %v117_v53 = vmul.f32 %v116_v41, %v115_v40  ;;  %633 = vmatpush1.bf16.msra.mxu1 %v852_v43  ;;  %v166_v31 = vlaneseq }
  0x4b   :  { %390 = vmatpush1.bf16.msra.mxu0 %v813_v7  ;;  %v93_v33 = vadd.f32 %v92_v22, %v88_v28  ;;  %v853_v48 = vld [vmem:[#allocation9 + $0x114] ss:$8 sps:$4 sm:$0xff]   ;;  %v832_v49 = vld [vmem:[#allocation9 + $0xa4] ss:$8 sps:$4 sm:$0xff]   ;;  %v855_v54 = vld [vmem:[#allocation9 + $0x110] ss:$8 sps:$4 sm:$0xff]   ;;  %v122_v59 = vmul.f32 %v121_v50, %v120_v47 }
  0x4c   :  { %391 = vmatprep.subr.bf16.mxu0 %v814_v8  ;;  %v125_v51 = vld [vmem:[#allocation8 + $0x10] ss:$8 sm:$0x3]  ;;  %s1100_s1 = sld [smem:[#allocation6]]  ;;  %v126_v55 = vstv %s1088_s14  ;;  %634 = vmatprep.subr.bf16.mxu1 %v853_v48  ;;  %v856_v56 = vld [vmem:[#allocation9 + $0x124] ss:$8 sps:$4 sm:$0xff]   ;;  %v131_v62 = vstv %s1091_s15 }
  0x4d   :  { %v98_v38 = vadd.f32 %v97_v29, %v93_v33  ;;  %v834_v57 = vld [vmem:[#allocation9 + $0xa0] ss:$8 sps:$4 sm:$0xff]   ;;  %v835_v61 = vld [vmem:[#allocation9 + $0xb4] ss:$8 sps:$4 sm:$0xff]   ;;  %s1103_s18 = sld [smem:[#allocation6 + $0x81]]  ;;  %v127_v1 = vmul.f32 %v126_v55, %v125_v51  ;;  %s1106_s19 = sld [smem:[#allocation6 + $0x2]]  ;;  %v136_v3 = vstv %s1094_s16 }
  0x4e   :  { %v130_v60 = vld [vmem:[#allocation8 + $0x11] ss:$8 sm:$0x3]  ;;  %v135_v63 = vld [vmem:[#allocation8 + $0x12] ss:$8 sm:$0x3]  ;;  %635 = vmatpush1.bf16.msra.mxu1 %v855_v54 }
  0x4f   :  { %392 = vmatpush1.bf16.msra.mxu0 %v816_v9  ;;  %v103_v45 = vadd.f32 %v102_v34, %v98_v38  ;;  %v858_v2 = vld [vmem:[#allocation9 + $0x120] ss:$8 sps:$4 sm:$0xff]   ;;  %636 = vmatprep.subr.bf16.mxu1 %v856_v56  ;;  %v859_v4 = vld [vmem:[#allocation9 + $0x134] ss:$8 sps:$4 sm:$0xff]   ;;  %v837_v5 = vld [vmem:[#allocation9 + $0xb0] ss:$8 sps:$4 sm:$0xff]   ;;  %v132_v7 = vmul.f32 %v131_v62, %v130_v60 }
  0x50   :  { %393 = vmatprep.subr.bf16.mxu0 %v817_v10  ;;  %v140_v8 = vld [vmem:[#allocation8 + $0x13] ss:$8 sm:$0x3]  ;;  %v838_v9 = vld [vmem:[#allocation9 + $0xc4] ss:$8 sps:$4 sm:$0xff]   ;;  %s1109_s20 = sld [smem:[#allocation6 + $0x82]]  ;;  %v141_v10 = vstv %s1097_s17 }
  0x51   :  { %v108_v52 = vadd.f32 %v107_v39, %v103_v45  ;;  %v862_v16 = vld [vmem:[#allocation9 + $0x144] ss:$8 sps:$4 sm:$0xff]   ;;  %v840_v17 = vld [vmem:[#allocation9 + $0xc0] ss:$8 sps:$4 sm:$0xff]   ;;  %v142_v19 = vmul.f32 %v141_v10, %v140_v8  ;;  %v841_v21 = vld [vmem:[#allocation9 + $0xd4] ss:$8 sps:$4 sm:$0xff]  }
  0x52   :  { %637 = vmatpush1.bf16.msra.mxu1 %v858_v2  ;;  %v146_v15 = vstv %s1100_s1  ;;  %v150_v20 = vld [vmem:[#allocation8 + $0x15] ss:$8 sm:$0x3]  ;;  %v155_v23 = vld [vmem:[#allocation8 + $0x16] ss:$8 sm:$0x3] }
  0x53   :  { %394 = vmatpush1.bf16.msra.mxu0 %v819_v11  ;;  %v113_v58 = vadd.f32 %v112_v46, %v108_v52  ;;  %v145_v11 = vld [vmem:[#allocation8 + $0x14] ss:$8 sm:$0x3]  ;;  %638 = vmatprep.subr.bf16.mxu1 %v859_v4  ;;  %v151_v22 = vstv %s1103_s18  ;;  %v865_v28 = vld [vmem:[#allocation9 + $0x154] ss:$8 sps:$4 sm:$0xff]   ;;  %v1117_v42 = vshrl.u32 %v166_v31, 7 }
  0x54   :  { %395 = vmatprep.subr.bf16.mxu0 %v820_v12  ;;  %v147_v25 = vmul.f32 %v146_v15, %v145_v11  ;;  %v152_v30 = vmul.f32 %v151_v22, %v150_v20  ;;  %v160_v33 = vld [vmem:[#allocation8 + $0x17] ss:$8 sm:$0x3]  ;;  %v867_v37 = vld [vmem:[#allocation9 + $0x150] ss:$8 sps:$4 sm:$0xff]   ;;  %s1003_s21 = smov [#allocation11]  }
  0x55   :  { %v118_v0 = vadd.f32 %v117_v53, %v113_v58  ;;  %v844_v38 = vld [vmem:[#allocation9 + $0xe4] ss:$8 sps:$4 sm:$0xff]   ;;  %v846_v43 = vld [vmem:[#allocation9 + $0xe0] ss:$8 sps:$4 sm:$0xff]   ;;  %v847_v46 = vld [vmem:[#allocation9 + $0xf4] ss:$8 sps:$4 sm:$0xff]  }
  0x56   :  { %v161_v34 = vstv %s1109_s20  ;;  %v868_v39 = vld [vmem:[#allocation9 + $0x164] ss:$8 sps:$4 sm:$0xff]   ;;  %v870_v45 = vld [vmem:[#allocation9 + $0x160] ss:$8 sps:$4 sm:$0xff]   ;;  %v871_v47 = vld [vmem:[#allocation9 + $0x174] ss:$8 sps:$4 sm:$0xff]  }
  0x57   :  { %396 = vmatpush1.bf16.msra.mxu0 %v822_v13  ;;  %v123_v6 = vadd.f32 %v122_v59, %v118_v0  ;;  %v137_v13 = vmul.f32 %v136_v3, %v135_v63  ;;  %v162_v41 = vmul.f32 %v161_v34, %v160_v33  ;;  %v1123_v50 = vsub.s32 0, %v1117_v42  ;;  %v849_v51 = vld [vmem:[#allocation9 + $0xf0] ss:$8 sps:$4 sm:$0xff]   ;;  %v874_v54 = vld [vmem:[#allocation9 + $0x184] ss:$8 sps:$4 sm:$0xff]   ;;  %s702_s22 = sshll.u32 %s1003_s21, 4  ;;  %s703_s22 = int_to_ptr.vmem [resolvable:$true] %s702_s22 }
  0x58   :  { %397 = vmatprep.subr.bf16.mxu0 %v823_v14  ;;  %v861_v14 = vld [vmem:[#allocation9 + $0x130] ss:$8 sps:$4 sm:$0xff]   ;;  %v876_v59 = vld [vmem:[#allocation9 + $0x180] ss:$8 sps:$4 sm:$0xff]   ;;  %v877_v60 = vld [vmem:[#allocation9 + $0x194] ss:$8 sps:$4 sm:$0xff]   ;;  %p967_p9 = scmp.lt.s32.totalorder %s703_s22, %s703_s22 }
  0x59   :  { %v128_v12 = vadd.f32 %v127_v1, %v123_v6  ;;  %639 = vmatpush1.bf16.msra.mxu1 %v861_v14  ;;  %v873_v53 = vld [vmem:[#allocation9 + $0x170] ss:$8 sps:$4 sm:$0xff]   ;;  %v880_v62 = vld [vmem:[#allocation9 + $0x1a4] ss:$8 sps:$4 sm:$0xff]   ;;  %v882_v63 = vld [vmem:[#allocation9 + $0x1a0] ss:$8 sps:$4 sm:$0xff]  }
  0x5a   :  { %640 = vmatprep.subr.bf16.mxu1 %v862_v16  ;;  %v883_v0 = vld [vmem:[#allocation9 + $0x1b4] ss:$8 sps:$4 sm:$0xff]   ;;  %v885_v1 = vld [vmem:[#allocation9 + $0x1b0] ss:$8 sps:$4 sm:$0xff]   ;;  %v886_v2 = vld [vmem:[#allocation9 + $0x1c4] ss:$8 sps:$4 sm:$0xff]  }
  0x5b   :  { %398 = vmatpush1.bf16.msra.mxu0 %v825_v26  ;;  %v133_v18 = vadd.f32 %v132_v7, %v128_v12  ;;  %v864_v26 = vld [vmem:[#allocation9 + $0x140] ss:$8 sps:$4 sm:$0xff]   ;;  %v889_v4 = vld [vmem:[#allocation9 + $0x1d4] ss:$8 sps:$4 sm:$0xff]   ;;  %v892_v6 = vld [vmem:[#allocation9 + $0x1e4] ss:$8 sps:$4 sm:$0xff]  }
  0x5c   :  { %399 = vmatprep.subr.bf16.mxu0 %v826_v27  ;;  %v156_v27 = vstv %s1106_s19  ;;  %v888_v3 = vld [vmem:[#allocation9 + $0x1c0] ss:$8 sps:$4 sm:$0xff]   ;;  %v895_v8 = vld [vmem:[#allocation9 + $0x1f4] ss:$8 sps:$4 sm:$0xff]   ;;  %v1002_v22 = vmov 1966171168  }
  0x5d   :  { %v138_v24 = vadd.f32 %v137_v13, %v133_v18  ;;  %v157_v36 = vmul.f32 %v156_v27, %v155_v23  ;;  %641 = vmatpush1.bf16.msra.mxu1 %v864_v26  ;;  %v894_v7 = vld [vmem:[#allocation9 + $0x1e0] ss:$8 sps:$4 sm:$0xff]   ;;  %v211_v10 = vld [vmem:[#allocation8 + $0x21] ss:$8 sm:$0x3]  ;;  %v677_v23 = vunpack.c.l.s4 %v1002_v22  ;;  %vm693_vm0 = vcmp.lt.s32.totalorder %v166_v31, 256 }
  0x5e   :  { %642 = vmatprep.subr.bf16.mxu1 %v865_v28  ;;  %v376_v11 = vrot.slane %v211_v10, %v1123_v50  ;;  %s962_s23 = scalar_lea.vmem %s703_s22, 32 }
  0x5f   :  { %400 = vmatpush1.bf16.msra.mxu0 %v828_v32  ;;  %v143_v29 = vadd.f32 %v142_v19, %v138_v24  ;;  %v843_v32 = vld [vmem:[#allocation9 + $0xd0] ss:$8 sps:$4 sm:$0xff]   ;;  %v678_v26 = vunpack.c.0.s8 %v677_v23  ;;  %p963_p8 = scmp.ne.s32.totalorder %s703_s22, %s962_s23  ;;  %p968_p10 = scmp.lt.s32.totalorder %s962_s23, %s962_s23 }
  0x60   :  { %401 = vmatprep.subr.bf16.mxu0 %v829_v35 }
  0x61   :  { %v148_v35 = vadd.f32 %v147_v25, %v143_v29  ;;  %643 = vmatpush1.bf16.msra.mxu1 %v867_v37  ;;  %v681_v33 = vsub.s32 %v678_v26, %v1117_v42  ;;  %p969_p11 = por %p968_p10, %p967_p9 }
  0x62   :  { %644 = vmatprep.subr.bf16.mxu1 %v868_v39 }
  0x63   :  { %402 = vmatpush1.bf16.msra.mxu0 %v831_v44  ;;  %v153_v40 = vadd.f32 %v152_v30, %v148_v35  ;;  %p970_p12 = pnand %p969_p11, %p963_p8 }
  0x64   :  { %403 = vmatprep.subr.bf16.mxu0 %v832_v49  ;;  %v1120_v49 = vsub.s32 1, %v1117_v42 }
  0x65   :  { %v158_v44 = vadd.f32 %v157_v36, %v153_v40  ;;  %645 = vmatpush1.bf16.msra.mxu1 %v870_v45 }
  0x66   :  { %646 = vmatprep.subr.bf16.mxu1 %v871_v47  ;;  %v380_v12 = vrot.slane %v211_v10, %v1120_v49 }
  0x67   :  { %404 = vmatpush1.bf16.msra.mxu0 %v834_v57  ;;  %v163_v48 = vadd.f32 %v162_v41, %v158_v44 }
  0x68   :  { %405 = vmatprep.subr.bf16.mxu0 %v835_v61  ;;  %v879_v61 = vld [vmem:[#allocation9 + $0x190] ss:$8 sps:$4 sm:$0xff]  }
  0x69   :  { %v164_v52 = vmax.f32 %v163_v48, 0.0  ;;  %647 = vmatpush1.bf16.msra.mxu1 %v873_v53 }
  0x6a   :  { %648 = vmatprep.subr.bf16.mxu1 %v874_v54 }
  0x6b   :  { %406 = vmatpush1.bf16.msra.mxu0 %v837_v5  ;;  %v173_v55 = vrot.slane %v164_v52, %v1120_v49  ;;  %v169_v56 = vrot.slane %v164_v52, %v1123_v50  ;;  %v891_v5 = vld [vmem:[#allocation9 + $0x1d0] ss:$8 sps:$4 sm:$0xff]  }
  0x6c   :  { %407 = vmatprep.subr.bf16.mxu0 %v838_v9  ;;  %v897_v9 = vld [vmem:[#allocation9 + $0x1f0] ss:$8 sps:$4 sm:$0xff]  }
  0x6d   :  { %v177_v57 = vpack.c.bf16 %v173_v55, %v173_v55  ;;  %v176_v58 = vpack.c.bf16 %v169_v56, %v169_v56  ;;  %649 = vmatpush1.bf16.msra.mxu1 %v876_v59 }
  0x6e   :  { %650 = vmatprep.subr.bf16.mxu1 %v877_v60 }
  0x6f   :  { %408 = vmatpush1.bf16.msra.mxu0 %v840_v17  ;;  %415 = vmatprep.mubr.bf16.mxu0 %v177_v57 }
  0x70   :  { %409 = vmatprep.subr.bf16.mxu0 %v841_v21  ;;  %v460_v21 = vld [vmem:[#allocation8 + $0x22] ss:$8 sm:$0x3] }
  0x71   :  { %651 = vmatpush1.bf16.msra.mxu1 %v879_v61  ;;  %v625_v24 = vrot.slane %v460_v21, %v1123_v50  ;;  %v629_v25 = vrot.slane %v460_v21, %v1120_v49 }
  0x72   :  { %652 = vmatprep.subr.bf16.mxu1 %v880_v62 }
  0x73   :  { %410 = vmatpush1.bf16.msra.mxu0 %v843_v32 }
  0x74   :  { %411 = vmatprep.subr.bf16.mxu0 %v844_v38 }
  0x75   :  { %653 = vmatpush1.bf16.msra.mxu1 %v882_v63 }
  0x76   :  { %654 = vmatprep.subr.bf16.mxu1 %v883_v0 }
  0x77   :  { %412 = vmatpush1.bf16.msra.mxu0 %v846_v43 }
  0x78   :  { %413 = vmatprep.subr.bf16.mxu0 %v847_v46 }
  0x79   :  { %655 = vmatpush1.bf16.msra.mxu1 %v885_v1 }
  0x7a   :  { %656 = vmatprep.subr.bf16.mxu1 %v886_v2 }
  0x7b   :  { %414 = vmatpush1.bf16.msra.mxu0 %v849_v51 }
  0x7d   :  { %657 = vmatpush1.bf16.msra.mxu1 %v888_v3 }
  0x7e   :  { %416 = vmatmul.mubr.bf16.vlgmr.msra.gmra.mrb[0].mxu0 %v176_v58  ;;  %658 = vmatprep.subr.bf16.mxu1 %v889_v4 }
  0x81   :  { %659 = vmatpush1.bf16.msra.mxu1 %v891_v5 }
  0x82   :  { %660 = vmatprep.subr.bf16.mxu1 %v892_v6 }
  0x85   :  { %661 = vmatpush1.bf16.msra.mxu1 %v894_v7 }
  0x86   :  { %662 = vmatprep.subr.bf16.mxu1 %v895_v8 }
  0x89   :  { %663 = vmatpush1.bf16.msra.mxu1 %v897_v9 }
 0x151   :  { %v417_v13 = vpop.f32.mrb[0].mxu0 }
 0x152   :  { %v418_v14 = vadd.f32 %v417_v13, %v376_v11  ;;  %v419_v15 = vpop.f32.mrb[1].mxu0 }
 0x153   :  { %v421_v16 = vpop.f32.mrb[2].mxu0  ;;  %v420_v17 = vadd.f32 %v419_v15, %v380_v12 }
 0x154   :  { %v422_v18 = vpop.f32.mrb[3].mxu0  ;;  %v424_v20 = vpack.c.bf16 %v418_v14, %v418_v14 }
 0x155   :  { %v425_v19 = vpack.c.bf16 %v420_v17, %v420_v17 }
 0x157   :  { %664 = vmatprep.mubr.bf16.mxu1 %v425_v19 }
 0x158   :  { %665 = vmatmul.mubr.bf16.vlgmr.msra.gmra.mrb[0].mxu1 %v424_v20 }
 0x22b   :  { %v666_v27 = vpop.f32.mrb[0].mxu1 }
 0x22c   :  { %v667_v28 = vadd.f32 %v666_v27, %v625_v24  ;;  %v668_v29 = vpop.f32.mrb[1].mxu1 }
 0x22d   :  { %v669_v30 = vadd.f32 %v668_v29, %v629_v25  ;;  %v670_v32 = vpop.f32.mrb[2].mxu1 }
 0x22e   :  { %v671_v34 = vpop.f32.mrb[3].mxu1 }
 0x22f   :  { %v675_v35 = vcombine.low %v667_v28, %v669_v30 }
 0x231   :  { %v682_v36 = vrot.slane %v675_v35, %v681_v33 }
 0x233   :  { %v689_v37 = vrot.slane %v682_v36, %v681_v33 }
 0x235   :  { %695 = vst.msk [vmem:[#allocation11] sm:$0x3] %vm693_vm0, %v689_v37 }
 0x236   :  { %973 = shalt.err (!%p970_p12)
}
 0x237   :  { %s974_s26 = scalar_lea.hbm %s1149_s4, 32 }
 0x238   :  { %p975_p13 = scmp.ne.s32.totalorder %s1149_s4, %s974_s26  ;;  %p978_p0 = scmp.lt.u32.totalorder %s974_s26, %s1149_s4 }
 0x23a   :  { %p980_p1 = pnand %p978_p0, %p975_p13 }
 0x23c   :  { %983 = shalt.err (!%p980_p1)
}
 0x23d   :  { %705 = dma.vmem_to_hbm [thread:$0]  %s703_s22, 32, %s1149_s4, [#allocation4]  }
 0x23e   :  { %992 = dma.done.wait [#allocation4], 32  }
 0x23f   :  { %993 = vsyncadd [#allocation4], 4294967264 }
 0x240   :  { %709 = vsyncpa [#allocation3], 1 }
 0x241   :  { %710 = vsyncpa [#allocation10], 1 }
 0x242   :  { %711 = vsyncpa [#allocation4], 1 }
 0x243   :  { %712 = vsyncpa [#allocation5], 1 }
 0x244   :  { %713 = vsyncpa [#allocation7], 1 }

</bundles_post_ra>
